<compile_context>
chip_gen: v6e
topology: v6e:2x2x1
jax: 0.10.0
libtpu: 0.0.40
codegen_flags: <defaults>
</compile_context>

<pallas_src>
import functools

import jax
import jax.numpy as jnp
from jax import lax
from jax.experimental import pallas as pl
from jax.experimental.pallas import tpu as pltpu


def _round_up(a, b):
    return (a + b - 1) // b * b


def _opt_attention_kernel(hidden_ref, wq_ref, wk_ref, wv_ref,
                          bq_ref, bk_ref, bv_ref, wo_ref, bo_ref,
                          out_ref, *, block_q, group_heads):
    """One (query-block, head-group) grid step.

    Grid = (num_q_blocks [parallel], num_head_groups [arbitrary]).
    The output block index is constant across the head-group axis, so the
    out_ref tile stays resident in VMEM and is used directly as the f32
    accumulator (no scratch buffer).
    """
    qi = pl.program_id(0)
    hg = pl.program_id(1)
    f32 = jnp.float32

    # Initialize the output accumulator with the out_proj bias exactly once
    # per query block (first head-group iteration).
    @pl.when(hg == 0)
    def _():
        out_ref[...] = jnp.broadcast_to(bo_ref[...].astype(f32), out_ref.shape)

    x = hidden_ref[...]                                    # [S_pad, E_pad] bf16
    q_start = pl.multiple_of(qi * block_q, block_q)
    xq = hidden_ref[pl.ds(q_start, block_q), :]            # [tq, E_pad]    bf16
    cdt = x.dtype

    # Grouped QKV projections: N = group width (lane dense), bf16 MXU inputs,
    # f32 accumulation.  Attention scaling is pre-folded into wq / bq.
    q = jnp.dot(xq, wq_ref[...], preferred_element_type=f32) + bq_ref[...].astype(f32)
    k = jnp.dot(x, wk_ref[...], preferred_element_type=f32) + bk_ref[...].astype(f32)
    v = jnp.dot(x, wv_ref[...], preferred_element_type=f32) + bv_ref[...].astype(f32)

    qh = q.astype(cdt)                                     # [tq,    G*Dh_pad]
    kh = k.astype(cdt)                                     # [S_pad, G*Dh_pad]
    vh = v.astype(cdt)                                     # [S_pad, G*Dh_pad]

    s_kv = x.shape[0]
    dh = qh.shape[-1] // group_heads

    # Causal mask in global token coordinates (also hides padded key rows,
    # whose indices exceed every real query index).  Built once per step.
    row = lax.broadcasted_iota(jnp.int32, (block_q, s_kv), 0) + qi * block_q
    col = lax.broadcasted_iota(jnp.int32, (block_q, s_kv), 1)
    causal = col <= row

    # TODO(synk): for very long sequences add causal key-block skipping /
    # online softmax over key tiles instead of a full [tq, S] score row.
    for g in range(group_heads):                           # small static unroll
        sl = slice(g * dh, (g + 1) * dh)
        # scores = q_g . k_g^T via dot_general (no materialized transpose)
        s_g = lax.dot_general(
            qh[:, sl], kh[:, sl],
            dimension_numbers=(((1,), (1,)), ((), ())),
            preferred_element_type=f32)                    # [tq, S_pad] f32
        s_g = jnp.where(causal, s_g, -1e30)

        m = jnp.max(s_g, axis=-1, keepdims=True)
        p = jnp.exp(s_g - m)
        p = p * pl.reciprocal(jnp.sum(p, axis=-1, keepdims=True), approx=True)

        attn_g = jnp.dot(p.astype(cdt), vh[:, sl],
                         preferred_element_type=f32)       # [tq, Dh_pad]
        # Per-head slice of out_proj, accumulated straight into out_ref (f32).
        out_ref[...] += jnp.dot(attn_g.astype(cdt), wo_ref[g],
                                preferred_element_type=f32)


def opt_attention(hidden, W_qkv, b_qkv, W_out, b_out, num_heads, scaling,
                  *, block_q=128, target_group_width=256,
                  compute_dtype=jnp.bfloat16):
    """OPTAttention.forward for one flat token batch.

    hidden : [num_tokens, embed_dim]
    W_qkv  : [3*E, E] (torch nn.Linear layout), b_qkv : [3*E]
    W_out  : [E, E],  b_out : [E]
    """
    S, E = hidden.shape
    H = num_heads
    Dh = E // H

    # Heads per group: largest divisor of H with G*Dh <= target_group_width
    # (use 256 for v6e/v7x MXU, 128 for v5e).
    G = 1
    for cand in range(1, H + 1):
        if H % cand == 0 and cand * Dh <= target_group_width:
            G = cand
    NG = H // G

    # (8,128)-aligned, lane-dense padding: pad E and the per-group width to
    # multiples of 128, and the token axis to a multiple of the query tile.
    E_pad = _round_up(E, 128)
    gw_pad = _round_up(G * Dh, 128)
    Dh_pad = gw_pad // G if gw_pad % G == 0 else Dh
    gw_pad = G * Dh_pad
    block_q = min(block_q, _round_up(S, 8))
    S_pad = _round_up(S, block_q)

    f32 = jnp.float32
    # nn.Linear computes y = x @ W.T + b -> use W.T as the matmul weight.
    Wt = jnp.asarray(W_qkv, f32).T                       # [E, 3E]
    wq, wk, wv = jnp.split(Wt, 3, axis=-1)               # each [E, E]
    bq, bk, bv = jnp.split(jnp.asarray(b_qkv, f32), 3, axis=-1)
    # Fold the attention scaling into the Q projection (host side).
    wq = wq * scaling
    bq = bq * scaling

    def pack_w(w):                                       # [E,E] -> [NG, E_pad, gw_pad]
        w = w.reshape(E, H, Dh)
        w = jnp.pad(w, ((0, E_pad - E), (0, 0), (0, Dh_pad - Dh)))
        w = w.reshape(E_pad, NG, G, Dh_pad).transpose(1, 0, 2, 3)
        return w.reshape(NG, E_pad, gw_pad).astype(compute_dtype)

    def pack_b(b):                                       # [E] -> [NG, 1, gw_pad]
        b = b.reshape(H, Dh)
        b = jnp.pad(b, ((0, 0), (0, Dh_pad - Dh)))
        return b.reshape(NG, 1, gw_pad).astype(compute_dtype)

    wq_p, wk_p, wv_p = pack_w(wq), pack_w(wk), pack_w(wv)
    bq_p, bk_p, bv_p = pack_b(bq), pack_b(bk), pack_b(bv)

    # out_proj: y = attn @ W_out.T + b_out ; rows of W_out.T are head-major.
    wo = jnp.asarray(W_out, f32).T.reshape(H, Dh, E)
    wo = jnp.pad(wo, ((0, 0), (0, Dh_pad - Dh), (0, E_pad - E)))
    wo_p = wo.reshape(NG, G, Dh_pad, E_pad).astype(compute_dtype)
    bo_p = jnp.pad(jnp.asarray(b_out, f32), (0, E_pad - E)).reshape(1, E_pad)
    bo_p = bo_p.astype(compute_dtype)

    x = jnp.pad(jnp.asarray(hidden, f32),
                ((0, S_pad - S), (0, E_pad - E))).astype(compute_dtype)

    kernel = functools.partial(_opt_attention_kernel,
                               block_q=block_q, group_heads=G)

    grid = (S_pad // block_q, NG)
    per_group_w = pl.BlockSpec((None, E_pad, gw_pad), lambda qi, hg: (hg, 0, 0))
    per_group_b = pl.BlockSpec((None, 1, gw_pad), lambda qi, hg: (hg, 0, 0))

    out = pl.pallas_call(
        kernel,
        out_shape=jax.ShapeDtypeStruct((S_pad, E_pad), f32),
        grid_spec=pltpu.PrefetchScalarGridSpec(
            num_scalar_prefetch=0,
            grid=grid,
            in_specs=[
                pl.BlockSpec((S_pad, E_pad), lambda qi, hg: (0, 0)),   # hidden (resident)
                per_group_w, per_group_w, per_group_w,                 # w_q, w_k, w_v
                per_group_b, per_group_b, per_group_b,                 # b_q, b_k, b_v
                pl.BlockSpec((None, G, Dh_pad, E_pad),
                             lambda qi, hg: (hg, 0, 0, 0)),            # w_out per group
                pl.BlockSpec((1, E_pad), lambda qi, hg: (0, 0)),       # b_out
            ],
            out_specs=pl.BlockSpec((block_q, E_pad), lambda qi, hg: (qi, 0)),
        ),
        compiler_params=pltpu.CompilerParams(
            dimension_semantics=("parallel", "arbitrary"),
            vmem_limit_bytes=48 * 1024 * 1024),
    )(x, wq_p, wk_p, wv_p, bq_p, bk_p, bv_p, wo_p, bo_p)

    return out[:S, :E].astype(hidden.dtype)


def reference(hidden, W_qkv, b_qkv, W_out, b_out, num_heads, scaling):
    """Pure-JAX f32 reference mirroring the PyTorch forward (causal attention)."""
    S, E = hidden.shape
    Dh = E // num_heads
    qkv = hidden @ W_qkv.T + b_qkv
    q, k, v = jnp.split(qkv, 3, axis=-1)
    q = q.reshape(S, num_heads, Dh)
    k = k.reshape(S, num_heads, Dh)
    v = v.reshape(S, num_heads, Dh)
    scores = jnp.einsum('qhd,khd->hqk', q, k) * scaling
    mask = jnp.tril(jnp.ones((S, S), dtype=bool))
    scores = jnp.where(mask[None], scores, -1e30)
    p = jax.nn.softmax(scores, axis=-1)
    attn = jnp.einsum('hqk,khd->qhd', p, v).reshape(S, E)
    return attn @ W_out.T + b_out


if __name__ == "__main__":
    S, E, H = 20, 32, 4
    Dh = E // H
    scaling = Dh ** -0.5

    key = jax.random.PRNGKey(0)
    k1, k2, k3, k4, k5 = jax.random.split(key, 5)

    hidden = jax.random.normal(k1, (S, E), dtype=jnp.float32)
    # PyTorch Linear convention: weight [out_features, in_features]
    W_qkv = jax.random.normal(k2, (3 * E, E), dtype=jnp.float32) * 0.05
    b_qkv = jax.random.normal(k3, (3 * E,), dtype=jnp.float32) * 0.05
    W_out = jax.random.normal(k4, (E, E), dtype=jnp.float32) * 0.05
    b_out = jax.random.normal(k5, (E,), dtype=jnp.float32) * 0.05

    # Small block_q / group width so the test exercises both the parallel
    # query-tile grid axis and accumulation across >1 head group.
    out = opt_attention(hidden, W_qkv, b_qkv, W_out, b_out, H, scaling,
                        block_q=8, target_group_width=16)
    out = jax.block_until_ready(out)

    ref = reference(hidden, W_qkv, b_qkv, W_out, b_out, H, scaling)
    err = jnp.max(jnp.abs(out - ref))
    assert out.shape == ref.shape
    assert jnp.allclose(out, ref, atol=2e-2, rtol=2e-2), f"max abs err {err}"

    print("KERNEL_OK")
</pallas_src>

<mosaic_0001>
module attributes {stable_mosaic.version = 11 : i64} {
  func.func @_opt_attention_kernel(%arg0: i32, %arg1: i32, %arg2: memref<24x128xbf16, #tpu.memory_space<vmem>>, %arg3: memref<1x128x128xbf16, #tpu.memory_space<vmem>>, %arg4: memref<1x128x128xbf16, #tpu.memory_space<vmem>>, %arg5: memref<1x128x128xbf16, #tpu.memory_space<vmem>>, %arg6: memref<1x1x128xbf16, #tpu.memory_space<vmem>>, %arg7: memref<1x1x128xbf16, #tpu.memory_space<vmem>>, %arg8: memref<1x1x128xbf16, #tpu.memory_space<vmem>>, %arg9: memref<1x2x64x128xbf16, #tpu.memory_space<vmem>>, %arg10: memref<1x128xbf16, #tpu.memory_space<vmem>>, %arg11: memref<8x128xf32, #tpu.memory_space<vmem>>) attributes {dimension_semantics = [#tpu.dimension_semantics<parallel>, #tpu.dimension_semantics<arbitrary>], iteration_bounds = array<i64: 3, 2>, scalar_prefetch = 0 : i64, scratch_operands = 0 : i64, tpu.core_type = #tpu.core_type<tc>, window_params = [{pipeline_mode = #tpu.pipeline_mode<synchronous>, transform_indices = @transform_0, window_bounds = array<i64: 24, 128>}, {transform_indices = @transform_1, window_bounds = array<i64: 1, 128, 128>}, {transform_indices = @transform_2, window_bounds = array<i64: 1, 128, 128>}, {transform_indices = @transform_3, window_bounds = array<i64: 1, 128, 128>}, {transform_indices = @transform_4, window_bounds = array<i64: 1, 1, 128>}, {transform_indices = @transform_5, window_bounds = array<i64: 1, 1, 128>}, {transform_indices = @transform_6, window_bounds = array<i64: 1, 1, 128>}, {transform_indices = @transform_7, window_bounds = array<i64: 1, 2, 64, 128>}, {pipeline_mode = #tpu.pipeline_mode<synchronous>, transform_indices = @transform_8, window_bounds = array<i64: 1, 128>}, {transform_indices = @transform_9, window_bounds = array<i64: 8, 128>}]} {
    %c0_i32 = arith.constant 0 : i32
    %0 = arith.cmpi eq, %arg1, %c0_i32 : i32
    %1 = arith.extui %0 : i1 to i32
    %c0_i32_0 = arith.constant 0 : i32
    %2 = arith.cmpi ne, %1, %c0_i32_0 : i32
    scf.if %2 {
      %c0_51 = arith.constant 0 : index
      %c0_52 = arith.constant 0 : index
      %91 = vector.load %arg10[%c0_51, %c0_52] : memref<1x128xbf16, #tpu.memory_space<vmem>>, vector<1x128xbf16>
      %92 = arith.extf %91 : vector<1x128xbf16> to vector<1x128xf32>
      %93 = vector.shape_cast %92 : vector<1x128xf32> to vector<1x128xf32>
      %94 = vector.broadcast %93 : vector<1x128xf32> to vector<8x128xf32>
      %c0_53 = arith.constant 0 : index
      %c0_54 = arith.constant 0 : index
      %95 = vector.load %arg11[%c0_53, %c0_54] : memref<8x128xf32, #tpu.memory_space<vmem>>, vector<8x128xf32>
      tpu.vector_store %arg11[%c0_53, %c0_54], %94 {strides = array<i32>} : memref<8x128xf32, #tpu.memory_space<vmem>>, vector<8x128xf32>,
    } else {
    }
    %c0 = arith.constant 0 : index
    %c0_1 = arith.constant 0 : index
    %3 = vector.load %arg2[%c0, %c0_1] : memref<24x128xbf16, #tpu.memory_space<vmem>>, vector<24x128xbf16>
    %c8_i32 = arith.constant 8 : i32
    %4 = arith.muli %arg0, %c8_i32 : i32
    %5 = tpu.assume_multiple %4, 8 : i32
    %6 = arith.index_cast %5 : i32 to index
    %c0_2 = arith.constant 0 : index
    %7 = vector.load %arg2[%6, %c0_2] : memref<24x128xbf16, #tpu.memory_space<vmem>>, vector<8x128xbf16>
    %c0_3 = arith.constant 0 : index
    %c0_4 = arith.constant 0 : index
    %c0_5 = arith.constant 0 : index
    %8 = vector.load %arg3[%c0_3, %c0_4, %c0_5] : memref<1x128x128xbf16, #tpu.memory_space<vmem>>, vector<1x128x128xbf16>
    %9 = vector.shape_cast %8 : vector<1x128x128xbf16> to vector<128x128xbf16>
    %cst = arith.constant dense<0.000000e+00> : vector<8x128xf32>
    %10 = tpu.matmul %7, %9, %cst {dimension_numbers = #tpu.dot_dimension_numbers<[1], [0], [0], [1], [0, 0, 1, 1], [], []>} : vector<8x128xbf16>, vector<128x128xbf16>, vector<8x128xf32> -> vector<8x128xf32>
    %c0_6 = arith.constant 0 : index
    %c0_7 = arith.constant 0 : index
    %c0_8 = arith.constant 0 : index
    %11 = vector.load %arg6[%c0_6, %c0_7, %c0_8] : memref<1x1x128xbf16, #tpu.memory_space<vmem>>, vector<1x1x128xbf16>
    %12 = vector.shape_cast %11 : vector<1x1x128xbf16> to vector<1x128xbf16>
    %13 = arith.extf %12 : vector<1x128xbf16> to vector<1x128xf32>
    %14 = vector.broadcast %13 : vector<1x128xf32> to vector<8x128xf32>
    %15 = arith.addf %10, %14 : vector<8x128xf32>
    %c0_9 = arith.constant 0 : index
    %c0_10 = arith.constant 0 : index
    %c0_11 = arith.constant 0 : index
    %16 = vector.load %arg4[%c0_9, %c0_10, %c0_11] : memref<1x128x128xbf16, #tpu.memory_space<vmem>>, vector<1x128x128xbf16>
    %17 = vector.shape_cast %16 : vector<1x128x128xbf16> to vector<128x128xbf16>
    %cst_12 = arith.constant dense<0.000000e+00> : vector<24x128xf32>
    %18 = tpu.matmul %3, %17, %cst_12 {dimension_numbers = #tpu.dot_dimension_numbers<[1], [0], [0], [1], [0, 0, 1, 1], [], []>} : vector<24x128xbf16>, vector<128x128xbf16>, vector<24x128xf32> -> vector<24x128xf32>
    %c0_13 = arith.constant 0 : index
    %c0_14 = arith.constant 0 : index
    %c0_15 = arith.constant 0 : index
    %19 = vector.load %arg7[%c0_13, %c0_14, %c0_15] : memref<1x1x128xbf16, #tpu.memory_space<vmem>>, vector<1x1x128xbf16>
    %20 = vector.shape_cast %19 : vector<1x1x128xbf16> to vector<1x128xbf16>
    %21 = arith.extf %20 : vector<1x128xbf16> to vector<1x128xf32>
    %22 = vector.broadcast %21 : vector<1x128xf32> to vector<24x128xf32>
    %23 = arith.addf %18, %22 : vector<24x128xf32>
    %c0_16 = arith.constant 0 : index
    %c0_17 = arith.constant 0 : index
    %c0_18 = arith.constant 0 : index
    %24 = vector.load %arg5[%c0_16, %c0_17, %c0_18] : memref<1x128x128xbf16, #tpu.memory_space<vmem>>, vector<1x128x128xbf16>
    %25 = vector.shape_cast %24 : vector<1x128x128xbf16> to vector<128x128xbf16>
    %cst_19 = arith.constant dense<0.000000e+00> : vector<24x128xf32>
    %26 = tpu.matmul %3, %25, %cst_19 {dimension_numbers = #tpu.dot_dimension_numbers<[1], [0], [0], [1], [0, 0, 1, 1], [], []>} : vector<24x128xbf16>, vector<128x128xbf16>, vector<24x128xf32> -> vector<24x128xf32>
    %c0_20 = arith.constant 0 : index
    %c0_21 = arith.constant 0 : index
    %c0_22 = arith.constant 0 : index
    %27 = vector.load %arg8[%c0_20, %c0_21, %c0_22] : memref<1x1x128xbf16, #tpu.memory_space<vmem>>, vector<1x1x128xbf16>
    %28 = vector.shape_cast %27 : vector<1x1x128xbf16> to vector<1x128xbf16>
    %29 = arith.extf %28 : vector<1x128xbf16> to vector<1x128xf32>
    %30 = vector.broadcast %29 : vector<1x128xf32> to vector<24x128xf32>
    %31 = arith.addf %26, %30 : vector<24x128xf32>
    %32 = arith.truncf %15 : vector<8x128xf32> to vector<8x128xbf16>
    %33 = arith.truncf %23 : vector<24x128xf32> to vector<24x128xbf16>
    %34 = arith.truncf %31 : vector<24x128xf32> to vector<24x128xbf16>
    %35 = tpu.iota {dimensions = array<i32: 0>} : vector<8x24xi32>
    %c8_i32_23 = arith.constant 8 : i32
    %36 = arith.muli %arg0, %c8_i32_23 : i32
    %37 = vector.broadcast %36 : i32 to vector<8x24xi32>
    %38 = arith.addi %35, %37 : vector<8x24xi32>
    %39 = tpu.iota {dimensions = array<i32: 1>} : vector<8x24xi32>
    %40 = arith.cmpi sle, %39, %38 : vector<8x24xi32>
    %41 = vector.extract_strided_slice %32 {offsets = [0, 0], sizes = [8, 64], strides = [1, 1]} : vector<8x128xbf16> to vector<8x64xbf16>
    %42 = vector.extract_strided_slice %33 {offsets = [0, 0], sizes = [24, 64], strides = [1, 1]} : vector<24x128xbf16> to vector<24x64xbf16>
    %cst_24 = arith.constant dense<0.000000e+00> : vector<8x24xf32>
    %43 = tpu.matmul %41, %42, %cst_24 {dimension_numbers = #tpu.dot_dimension_numbers<[1], [1], [0], [0], [0, 0, 1, 0], [], []>} : vector<8x64xbf16>, vector<24x64xbf16>, vector<8x24xf32> -> vector<8x24xf32>
    %cst_25 = arith.constant -1.000000e+30 : f32
    %44 = vector.broadcast %cst_25 : f32 to vector<8x24xf32>
    %45 = arith.select %40, %43, %44 : vector<8x24xi1>, vector<8x24xf32>
    %cst_26 = arith.constant dense<0xFF800000> : vector<8xf32>
    %46 = vector.multi_reduction <maximumf>, %45, %cst_26 [1] : vector<8x24xf32> to vector<8xf32>
    %47 = vector.shape_cast %46 : vector<8xf32> to vector<8x1xf32>
    %48 = vector.broadcast %47 : vector<8x1xf32> to vector<8x24xf32>
    %49 = arith.subf %45, %48 : vector<8x24xf32>
    %50 = math.exp %49 : vector<8x24xf32>
    %cst_27 = arith.constant dense<0.000000e+00> : vector<8xf32>
    %51 = vector.multi_reduction <add>, %50, %cst_27 [1] : vector<8x24xf32> to vector<8xf32>
    %52 = vector.shape_cast %51 : vector<8xf32> to vector<8x1xf32>
    %53 = tpu.reciprocal %52 {approx = true} : vector<8x1xf32> -> vector<8x1xf32>
    %54 = vector.broadcast %53 : vector<8x1xf32> to vector<8x24xf32>
    %55 = arith.mulf %50, %54 : vector<8x24xf32>
    %56 = arith.truncf %55 : vector<8x24xf32> to vector<8x24xbf16>
    %57 = vector.extract_strided_slice %34 {offsets = [0, 0], sizes = [24, 64], strides = [1, 1]} : vector<24x128xbf16> to vector<24x64xbf16>
    %cst_28 = arith.constant dense<0.000000e+00> : vector<8x64xf32>
    %58 = tpu.matmul %56, %57, %cst_28 {dimension_numbers = #tpu.dot_dimension_numbers<[1], [0], [0], [1], [0, 0, 1, 1], [], []>} : vector<8x24xbf16>, vector<24x64xbf16>, vector<8x64xf32> -> vector<8x64xf32>
    %c0_29 = arith.constant 0 : index
    %c0_30 = arith.constant 0 : index
    %59 = vector.load %arg11[%c0_29, %c0_30] : memref<8x128xf32, #tpu.memory_space<vmem>>, vector<8x128xf32>
    %60 = arith.truncf %58 : vector<8x64xf32> to vector<8x64xbf16>
    %c0_31 = arith.constant 0 : index
    %c0_32 = arith.constant 0 : index
    %c0_33 = arith.constant 0 : index
    %c0_34 = arith.constant 0 : index
    %61 = vector.load %arg9[%c0_31, %c0_32, %c0_33, %c0_34] : memref<1x2x64x128xbf16, #tpu.memory_space<vmem>>, vector<1x1x64x128xbf16>
    %62 = vector.shape_cast %61 : vector<1x1x64x128xbf16> to vector<64x128xbf16>
    %cst_35 = arith.constant dense<0.000000e+00> : vector<8x128xf32>
    %63 = tpu.matmul %60, %62, %cst_35 {dimension_numbers = #tpu.dot_dimension_numbers<[1], [0], [0], [1], [0, 0, 1, 1], [], []>} : vector<8x64xbf16>, vector<64x128xbf16>, vector<8x128xf32> -> vector<8x128xf32>
    %64 = arith.addf %59, %63 : vector<8x128xf32>
    %c0_36 = arith.constant 0 : index
    %c0_37 = arith.constant 0 : index
    %65 = vector.load %arg11[%c0_36, %c0_37] : memref<8x128xf32, #tpu.memory_space<vmem>>, vector<8x128xf32>
    tpu.vector_store %arg11[%c0_36, %c0_37], %64 {strides = array<i32>} : memref<8x128xf32, #tpu.memory_space<vmem>>, vector<8x128xf32>,
    %66 = vector.extract_strided_slice %32 {offsets = [0, 64], sizes = [8, 64], strides = [1, 1]} : vector<8x128xbf16> to vector<8x64xbf16>
    %67 = vector.extract_strided_slice %33 {offsets = [0, 64], sizes = [24, 64], strides = [1, 1]} : vector<24x128xbf16> to vector<24x64xbf16>
    %cst_38 = arith.constant dense<0.000000e+00> : vector<8x24xf32>
    %68 = tpu.matmul %66, %67, %cst_38 {dimension_numbers = #tpu.dot_dimension_numbers<[1], [1], [0], [0], [0, 0, 1, 0], [], []>} : vector<8x64xbf16>, vector<24x64xbf16>, vector<8x24xf32> -> vector<8x24xf32>
    %cst_39 = arith.constant -1.000000e+30 : f32
    %69 = vector.broadcast %cst_39 : f32 to vector<8x24xf32>
    %70 = arith.select %40, %68, %69 : vector<8x24xi1>, vector<8x24xf32>
    %cst_40 = arith.constant dense<0xFF800000> : vector<8xf32>
    %71 = vector.multi_reduction <maximumf>, %70, %cst_40 [1] : vector<8x24xf32> to vector<8xf32>
    %72 = vector.shape_cast %71 : vector<8xf32> to vector<8x1xf32>
    %73 = vector.broadcast %72 : vector<8x1xf32> to vector<8x24xf32>
    %74 = arith.subf %70, %73 : vector<8x24xf32>
    %75 = math.exp %74 : vector<8x24xf32>
    %cst_41 = arith.constant dense<0.000000e+00> : vector<8xf32>
    %76 = vector.multi_reduction <add>, %75, %cst_41 [1] : vector<8x24xf32> to vector<8xf32>
    %77 = vector.shape_cast %76 : vector<8xf32> to vector<8x1xf32>
    %78 = tpu.reciprocal %77 {approx = true} : vector<8x1xf32> -> vector<8x1xf32>
    %79 = vector.broadcast %78 : vector<8x1xf32> to vector<8x24xf32>
    %80 = arith.mulf %75, %79 : vector<8x24xf32>
    %81 = arith.truncf %80 : vector<8x24xf32> to vector<8x24xbf16>
    %82 = vector.extract_strided_slice %34 {offsets = [0, 64], sizes = [24, 64], strides = [1, 1]} : vector<24x128xbf16> to vector<24x64xbf16>
    %cst_42 = arith.constant dense<0.000000e+00> : vector<8x64xf32>
    %83 = tpu.matmul %81, %82, %cst_42 {dimension_numbers = #tpu.dot_dimension_numbers<[1], [0], [0], [1], [0, 0, 1, 1], [], []>} : vector<8x24xbf16>, vector<24x64xbf16>, vector<8x64xf32> -> vector<8x64xf32>
    %c0_43 = arith.constant 0 : index
    %c0_44 = arith.constant 0 : index
    %84 = vector.load %arg11[%c0_43, %c0_44] : memref<8x128xf32, #tpu.memory_space<vmem>>, vector<8x128xf32>
    %85 = arith.truncf %83 : vector<8x64xf32> to vector<8x64xbf16>
    %c0_45 = arith.constant 0 : index
    %c1 = arith.constant 1 : index
    %c0_46 = arith.constant 0 : index
    %c0_47 = arith.constant 0 : index
    %86 = vector.load %arg9[%c0_45, %c1, %c0_46, %c0_47] : memref<1x2x64x128xbf16, #tpu.memory_space<vmem>>, vector<1x1x64x128xbf16>
    %87 = vector.shape_cast %86 : vector<1x1x64x128xbf16> to vector<64x128xbf16>
    %cst_48 = arith.constant dense<0.000000e+00> : vector<8x128xf32>
    %88 = tpu.matmul %85, %87, %cst_48 {dimension_numbers = #tpu.dot_dimension_numbers<[1], [0], [0], [1], [0, 0, 1, 1], [], []>} : vector<8x64xbf16>, vector<64x128xbf16>, vector<8x128xf32> -> vector<8x128xf32>
    %89 = arith.addf %84, %88 : vector<8x128xf32>
    %c0_49 = arith.constant 0 : index
    %c0_50 = arith.constant 0 : index
    %90 = vector.load %arg11[%c0_49, %c0_50] : memref<8x128xf32, #tpu.memory_space<vmem>>, vector<8x128xf32>
    tpu.vector_store %arg11[%c0_49, %c0_50], %89 {strides = array<i32>} : memref<8x128xf32, #tpu.memory_space<vmem>>, vector<8x128xf32>,
    return
  }
  func.func @transform_0(%arg0: i32, %arg1: i32) -> (i32, i32) {
    %c0_i32 = arith.constant 0 : i32
    %c0_i32_0 = arith.constant 0 : i32
    %c0_i32_1 = arith.constant 0 : i32
    return %c0_i32, %c0_i32_0 : i32, i32
  }
  func.func @transform_1(%arg0: i32, %arg1: i32) -> (i32, i32, i32) {
    %c0_i32 = arith.constant 0 : i32
    %c0_i32_0 = arith.constant 0 : i32
    %c0_i32_1 = arith.constant 0 : i32
    return %arg1, %c0_i32, %c0_i32_0 : i32, i32, i32
  }
  func.func @transform_2(%arg0: i32, %arg1: i32) -> (i32, i32, i32) {
    %c0_i32 = arith.constant 0 : i32
    %c0_i32_0 = arith.constant 0 : i32
    %c0_i32_1 = arith.constant 0 : i32
    return %arg1, %c0_i32, %c0_i32_0 : i32, i32, i32
  }
  func.func @transform_3(%arg0: i32, %arg1: i32) -> (i32, i32, i32) {
    %c0_i32 = arith.constant 0 : i32
    %c0_i32_0 = arith.constant 0 : i32
    %c0_i32_1 = arith.constant 0 : i32
    return %arg1, %c0_i32, %c0_i32_0 : i32, i32, i32
  }
  func.func @transform_4(%arg0: i32, %arg1: i32) -> (i32, i32, i32) {
    %c0_i32 = arith.constant 0 : i32
    %c0_i32_0 = arith.constant 0 : i32
    %c0_i32_1 = arith.constant 0 : i32
    return %arg1, %c0_i32, %c0_i32_0 : i32, i32, i32
  }
  func.func @transform_5(%arg0: i32, %arg1: i32) -> (i32, i32, i32) {
    %c0_i32 = arith.constant 0 : i32
    %c0_i32_0 = arith.constant 0 : i32
    %c0_i32_1 = arith.constant 0 : i32
    return %arg1, %c0_i32, %c0_i32_0 : i32, i32, i32
  }
  func.func @transform_6(%arg0: i32, %arg1: i32) -> (i32, i32, i32) {
    %c0_i32 = arith.constant 0 : i32
    %c0_i32_0 = arith.constant 0 : i32
    %c0_i32_1 = arith.constant 0 : i32
    return %arg1, %c0_i32, %c0_i32_0 : i32, i32, i32
  }
  func.func @transform_7(%arg0: i32, %arg1: i32) -> (i32, i32, i32, i32) {
    %c0_i32 = arith.constant 0 : i32
    %c0_i32_0 = arith.constant 0 : i32
    %c0_i32_1 = arith.constant 0 : i32
    %c0_i32_2 = arith.constant 0 : i32
    return %arg1, %c0_i32, %c0_i32_0, %c0_i32_1 : i32, i32, i32, i32
  }
  func.func @transform_8(%arg0: i32, %arg1: i32) -> (i32, i32) {
    %c0_i32 = arith.constant 0 : i32
    %c0_i32_0 = arith.constant 0 : i32
    %c0_i32_1 = arith.constant 0 : i32
    return %c0_i32, %c0_i32_0 : i32, i32
  }
  func.func @transform_9(%arg0: i32, %arg1: i32) -> (i32, i32) {
    %c0_i32 = arith.constant 0 : i32
    %c0_i32_0 = arith.constant 0 : i32
    return %arg0, %c0_i32 : i32, i32
  }
}

</mosaic_0001>

<bundles_post_ra>
// kernel: tpu_custom_call.1
= control target key start
LH: loop header
LB: loop body
LE: loop exit
PB: predicated region body
PF: predicated region fallthrough
CT: control target
= control target key end

     0   :  { %s2746_s0 = inlined_call_operand.hbm [shape: bf16[24,128], index: 0, kind: input, shape index: {}]   ;;  %s2747_s1 = inlined_call_operand.hbm [shape: bf16[2,128,128], index: 1, kind: input, shape index: {}]   ;;  %s2748_s2 = inlined_call_operand.hbm [shape: bf16[2,128,128], index: 2, kind: input, shape index: {}]   ;;  %s2749_s3 = inlined_call_operand.hbm [shape: bf16[2,128,128], index: 3, kind: input, shape index: {}]   ;;  %s2750_s4 = inlined_call_operand.vmem [shape: bf16[2,1,128], index: 4, kind: input, shape index: {}]   ;;  %s2751_s5 = inlined_call_operand.vmem [shape: bf16[2,1,128], index: 5, kind: input, shape index: {}]   ;;  %s2752_s6 = inlined_call_operand.vmem [shape: bf16[2,1,128], index: 6, kind: input, shape index: {}]   ;;  %s2753_s7 = inlined_call_operand.hbm [shape: bf16[2,2,64,128], index: 7, kind: input, shape index: {}]   ;;  %s2754_s8 = inlined_call_operand.vmem [shape: bf16[1,128], index: 8, kind: input, shape index: {}]   ;;  %s2755_s9 = inlined_call_operand.hbm [shape: f32[24,128], index: 9, kind: output, shape index: {}]  }
   0x1   :  { %2770 = sst [smem:[#allocation26_spill]] %s2747_s1 }
   0x2   :  { %2771 = sst [smem:[#allocation27_spill]] %s2749_s3 }
   0x3   :  { %2772 = sst [smem:[#allocation28_spill]] %s2754_s8 }
   0x4   :  { %2773 = sst [smem:[#allocation29_spill]] %s2755_s9 }
   0x5   :  { %14 = vsyncpa [#allocation3], 0 }
   0x6   :  { %15 = vsyncpa [#allocation6], 0 }
   0x7   :  { %17 = vsyncpa [#allocation6 + $0x1], 0 }
   0x8   :  { %18 = vsyncpa [#allocation9], 0 }
   0x9   :  { %20 = vsyncpa [#allocation9 + $0x1], 0 }
   0xa   :  { %21 = vsyncpa [#allocation4], 0 }
   0xb   :  { %23 = vsyncpa [#allocation4 + $0x1], 0  ;;  %s2270_s30 = smov 0   ;;  %s2272_s10 = smov 0  }
   0xc   :  { %s2274_s11 = smov 0   ;;  %s2276_s12 = smov 0  }
   0xd   :  { %s2278_s13 = smov 0   ;;  %s2280_s14 = smov 0  }
   0xe   :  { %s2282_s15 = smov 0   ;;  %s2284_s16 = smov 0  }
   0xf   :  { %s2286_s17 = smov 0   ;;  %s2288_s18 = smov 0  }
  0x10   :  { %s2290_s19 = smov 0  }
  0x11 LB: > { %2774 = sst [smem:[#allocation16_spill]] %s2175_s11  ;;  %s38_s20 = sadd.s32 1, %s2199_s17  ;;  %s2207_s19 = sphi %s2290_s19, %s29_s19   ;;  %s2203_s18 = sphi %s2288_s18, %s2813_s18   ;;  %s2199_s17 = sphi %s2286_s17, %s2812_s17   ;;  %s2195_s16 = sphi %s2284_s16, %s2811_s16   ;;  %s2191_s15 = sphi %s2282_s15, %s2810_s15   ;;  %s2187_s14 = sphi %s2280_s14, %s2809_s14   ;;  %s2183_s13 = sphi %s2278_s13, %s2817_s13   ;;  %s2179_s12 = sphi %s2276_s12, %s2816_s12   ;;  %s2175_s11 = sphi %s2274_s11, %s2807_s11   ;;  %s2171_s10 = sphi %s2272_s10, %s2815_s10   ;;  %s2167_s30 = sphi %s2270_s30, %s2814_s30  }
  0x12   : > { %2775 = sst [smem:[#allocation17_spill]] %s2187_s14  ;;  %s41_s21 = sadd.s32 1, %s2203_s18 }
  0x13   : > { %2776 = sst [smem:[#allocation18_spill]] %s2195_s16  ;;  %p39_p0 = scmp.ge.s32.totalorder %s38_s20, 2 }
  0x14   : > { %2777 = sst [smem:[#allocation19_spill]] %s2199_s17  ;;  %s69_s22 = sadd.s32 1, %s2187_s14 }
  0x15   : > { %2778 = sst [smem:[#allocation20_spill]] %s2203_s18  ;;  %p76_p1 = scmp.ne.s32.totalorder %s2187_s14, %s2183_s13 }
  0x16   : > { %p77_p2 = scmp.eq.s32.totalorder %s2207_s19, 0  ;;  %s2819_s20 = smov (%p39_p0, %s38_s20), 0 }
  0x17   : > { %2779 = sst [smem:[#allocation21_spill]] %s2819_s20  ;;  %s2821_s21 = smov (!%p39_p0, %s41_s21), %s2203_s18 }
  0x18   : > { %s66_s23 = ssub.s32 %s2199_s17, %s2819_s20  ;;  %p2336_p3 = por %p77_p2, %p76_p1 }
  0x19   : > { %p43_p4 = scmp.ge.s32.totalorder %s2821_s21, 3  ;;  %p67_p5 = scmp.eq.s32.totalorder %s66_s23, 0 }
  0x1a   : > { %p1802_p7 = scmp.lt.s32.totalorder %s2207_s19, 6  ;;  %s327_s29 = sand.u32 1, %s2187_s14  }
  0x1b   : > { %s2823_s21 = smov (%p43_p4, %s2821_s21), 0  ;;  %s2354_s20 = sshll.u32 %s327_s29, 6 }
  0x1c   : > { %2781 = sst [smem:[#allocation22_spill]] %s2823_s21  ;;  %s269_s26 = ssub.s32 %s2203_s18, %s2823_s21 }
  0x1d   : > { %s2343_s25 = scalar_select %p67_p5, %s2187_s14, %s69_s22  }
  0x1e   : > { %p2347_p6 = scmp.eq.s32.totalorder %s269_s26, 0  ;;  %s2357_s9 = sshll.u32 %s2199_s17, 10 }
  0x1f   : > { %2782 = sst [smem:[#allocation23_spill]] %s2343_s25  ;;  %s329_s25 = scalar_lea.vmem [#allocation5], %s2354_s20 }
  0x20   : > { %s2784_s1 = sld [smem:[#allocation26_spill]]  ;;  %s336_s21 = sshll.u32 %s329_s25, 4  ;;  %s337_s21 = int_to_ptr.vmem [resolvable:$true] %s336_s21 }
  0x21   : > { %p2366_p8 = pnand %p1802_p7, %p2336_p3  ;;  %s2786_s3 = sld [smem:[#allocation27_spill]] }
  0x22   : > { %s2787_s17 = sand.u32 1, %s2207_s19   ;;  %s1954_s16 = scalar_lea.vmem %s337_s21, 1024 }
  0x23   : > { %s2376_s14 = scalar_lea.sflag [#allocation6], %s2787_s17  ;;  %p1943_p9 = pneg %p2366_p8 }
  0x24   : > { %p1955_p10 = scmp.ne.s32.totalorder %s337_s21, %s1954_s16  ;;  %s2209_s24 = smov [#allocation5]  }
  0x25   : > { %s1959_s25 = sshll.u32 %s2209_s24, 4  ;;  %s1960_s25 = int_to_ptr.vmem [resolvable:$false] %s1959_s25 }
  0x26   : > { %s335_s22 = scalar_lea.hbm %s2784_s1, %s2357_s9  ;;  %p1957_p11 = pnand %p1955_p10, %p1943_p9 }
  0x27   : > { %s1961_s23 = scalar_lea.vmem %s1960_s25, 2048  ;;  %p1962_p13 = scmp.lt.s32.totalorder %s337_s21, %s1960_s25 }
  0x28   : > { %p1958_p12 = pneg %p1957_p11  ;;  %p1963_p0 = scmp.lt.s32.totalorder %s1961_s23, %s1954_s16 }
  0x2a   : > { %p1964_p1 = por %p1963_p0, %p1962_p13 }
  0x2c   : > { %p1965_p2 = pnand %p1964_p1, %p1958_p12 }
  0x2e   : > { %1968 = shalt.err (!%p1965_p2)
}
  0x2f   : > { %s2763_s28 = smov 64   ;;  %s2765_s17 = smov 4  }
  0x30   : > { %1787 = dma.hbm_to_vmem [thread:$0]  (!%p2366_p8), %s335_s22, 1024, %s337_s21, %s2376_s14, %s2763_s28, %s2763_s28, %s2765_s17  }
  0x31   : > { %s371_s29 = scalar_lea.vmem [#allocation8], %s2354_s20  ;;  %s2788_s25 = sand.u32 1, %s2207_s19  }
  0x32   : > { %s378_s24 = sshll.u32 %s371_s29, 4  ;;  %s2392_s16 = scalar_lea.sflag [#allocation9], %s2788_s25  ;;  %s379_s24 = int_to_ptr.vmem [resolvable:$true] %s378_s24 }
  0x33   : > { %s1982_s23 = scalar_lea.vmem %s379_s24, 1024  ;;  %s2212_s18 = smov [#allocation8]  }
  0x34   : > { %p1983_p3 = scmp.ne.s32.totalorder %s379_s24, %s1982_s23  ;;  %s1987_s1 = sshll.u32 %s2212_s18, 4  ;;  %s1988_s1 = int_to_ptr.vmem [resolvable:$false] %s1987_s1 }
  0x35   : > { %s1989_s8 = scalar_lea.vmem %s1988_s1, 2048  ;;  %p1990_p7 = scmp.lt.s32.totalorder %s379_s24, %s1988_s1 }
  0x36   : > { %p1985_p4 = pnand %p1983_p3, %p1943_p9  ;;  %p1991_p10 = scmp.lt.s32.totalorder %s1989_s8, %s1982_s23 }
  0x38   : > { %p1986_p5 = pneg %p1985_p4  ;;  %p1992_p11 = por %p1991_p10, %p1990_p7 }
  0x3a   : > { %p1993_p12 = pnand %p1992_p11, %p1986_p5 }
  0x3c   : > { %1996 = shalt.err (!%p1993_p12)
}
  0x3d   : > { %s2789_s29 = scalar_lea.hbm %s2786_s3, %s2357_s9  ;;  %s2409_s1 = sadd.s32 4294967295, %s2207_s19  }
  0x3e   : > { %1793 = dma.hbm_to_vmem [thread:$0]  (!%p2366_p8), %s2789_s29, 1024, %s379_s24, %s2392_s16, %s2763_s28, %s2763_s28, %s2765_s17  }
  0x3f   : > { %s1517_s8 = sadd.s32 4294967294, %s2207_s19   ;;  %p82_p13 = scmp.ne.s32.totalorder %s2183_s13, %s2179_s12 }
  0x40   : > { %p83_p0 = scmp.eq.s32.totalorder %s2409_s1, 0  ;;  %s272_s18 = sadd.s32 1, %s2175_s11 }
  0x41   : > { %p282_p1 = scmp.ne.s32.totalorder %s2175_s11, %s2171_s10  ;;  %p283_p3 = scmp.eq.s32.totalorder %s2409_s1, 5 }
  0x42   : > { %p2420_p2 = por %p83_p0, %p82_p13  ;;  %p288_p5 = scmp.ne.s32.totalorder %s2171_s10, %s2167_s30 }
  0x43   : > { %s2428_s24 = scalar_select %p2347_p6, %s2175_s11, %s272_s18  }
  0x44   : > { %p2430_p4 = por %p283_p3, %p282_p1  ;;  %p289_p7 = scmp.eq.s32.totalorder %s1517_s8, 5 }
  0x45   : > { %2791 = sst [smem:[#allocation24_spill]] %s2428_s24  ;;  %p1518_p10 = scmp.ge.s32.totalorder %s2207_s19, 1 }
  0x46   : > { %s2792_s23 = scalar_select %p2430_p4, 1, 0 }
  0x47   : > { %p296_p11 = scmp.lt.s32.totalorder %s2207_s19, 7  ;;  %p2438_p12 = por %p289_p7, %p288_p5 }
  0x48   : > { %s2213_s27 = smov [#allocation2]   ;;  %s356_s18 = scalar_lea.hbm %s2748_s2, %s2357_s9 }
  0x49   : > { %s2793_s12 = scalar_select %p2438_p12, 1, 0 }
  0x4a   : > { %p2442_p13 = pnand %p1518_p10, %p296_p11  ;;  %s308_s22 = sshll.u32 %s2213_s27, 4  ;;  %s2446_s22 = int_to_ptr.vmem [resolvable:$true] %s308_s22 }
  0x4b   : > { %2794 = sst [smem:[#allocation25_spill]] %s2793_s12  ;;  %s350_s28 = scalar_lea.vmem [#allocation7], %s2354_s20 }
  0x4c   : > { %p1780_p6 = pneg %p2442_p13  ;;  %s357_s17 = sshll.u32 %s350_s28, 4  ;;  %s358_s17 = int_to_ptr.vmem [resolvable:$true] %s357_s17 }
  0x4d   : > { %s2010_s24 = scalar_lea.vmem %s358_s17, 1024  ;;  %s2214_s27 = smov [#allocation7]  }
  0x4e   : > { %p2457_p1 = pnand %p1780_p6, %p83_p0  ;;  %p2011_p3 = scmp.ne.s32.totalorder %s358_s17, %s2010_s24 }
  0x4f   : > { %s2015_s11 = sshll.u32 %s2214_s27, 4  ;;  %s2016_s11 = int_to_ptr.vmem [resolvable:$false] %s2015_s11 }
  0x50   : > { %p2013_p5 = pnand %p2011_p3, %p1943_p9  ;;  %s2017_s12 = scalar_lea.vmem %s2016_s11, 2048 }
  0x51   : > { %p2018_p10 = scmp.lt.s32.totalorder %s358_s17, %s2016_s11  ;;  %p2019_p11 = scmp.lt.s32.totalorder %s2017_s12, %s2010_s24 }
  0x52   : > { %p2014_p7 = pneg %p2013_p5 }
  0x53   : > { %p2020_p12 = por %p2019_p11, %p2018_p10 }
  0x55   : > { %p2021_p4 = pnand %p2020_p12, %p2014_p7 }
  0x57   : > { %2024 = shalt.err (!%p2021_p4)
}
  0x58   : > { %s2797_s28 = smov 4   ;;  %s2798_s29 = smov 64  }
  0x59   : > { %1790 = dma.hbm_to_vmem [thread:$0]  (!%p2366_p8), %s356_s18, 1024, %s358_s17, %s2376_s14, %s2798_s29, %s2798_s29, %s2797_s28  }
  0x5a   : > { %s416_s11 = scalar_lea.hbm %s2753_s7, %s2357_s9  ;;  %p2027_p6 = pneg %p2457_p1 }
  0x5b   : > { %s2036_s24 = scalar_lea.vmem %s2446_s22, 192  ;;  %p2044_p5 = scmp.lt.s32.totalorder %s2446_s22, %s2446_s22 }
  0x5c   : > { %p2037_p4 = scmp.ne.s32.totalorder %s2446_s22, %s2036_s24  ;;  %p2045_p7 = scmp.lt.s32.totalorder %s2036_s24, %s2036_s24 }
  0x5e   : > { %p2039_p12 = pnand %p2037_p4, %p2027_p6  ;;  %p2046_p10 = por %p2045_p7, %p2044_p5 }
  0x60   : > { %p2040_p3 = pneg %p2039_p12 }
  0x62   : > { %p2047_p11 = pnand %p2046_p10, %p2040_p3 }
  0x64   : > { %2050 = shalt.err (!%p2047_p11)
}
  0x65   : > { %1783 = dma.hbm_to_vmem [thread:$0]  (!%p2457_p1), %s2746_s0, 192, %s2446_s22, [#allocation3], %s2798_s29, %s2798_s29, %s2797_s28  }
  0x66   : > { %s410_s12 = scalar_lea.vmem [#allocation10], %s2354_s20  ;;  %s2215_s3 = smov [#allocation10]  }
  0x67   : > { %s417_s18 = sshll.u32 %s410_s12, 4  ;;  %s2069_s27 = sshll.u32 %s2215_s3, 4  ;;  %s418_s18 = int_to_ptr.vmem [resolvable:$true] %s417_s18  ;;  %s2070_s27 = int_to_ptr.vmem [resolvable:$false] %s2069_s27 }
  0x68   : > { %s2064_s8 = scalar_lea.vmem %s418_s18, 1024  ;;  %s2071_s24 = scalar_lea.vmem %s2070_s27, 2048 }
  0x69   : > { %p2065_p6 = scmp.ne.s32.totalorder %s418_s18, %s2064_s8  ;;  %p2072_p3 = scmp.lt.s32.totalorder %s418_s18, %s2070_s27 }
  0x6a   : > { %p2073_p5 = scmp.lt.s32.totalorder %s2071_s24, %s2064_s8 }
  0x6b   : > { %p2067_p4 = pnand %p2065_p6, %p1943_p9 }
  0x6c   : > { %p2074_p7 = por %p2073_p5, %p2072_p3 }
  0x6d   : > { %p2068_p12 = pneg %p2067_p4 }
  0x6f   : > { %p2075_p10 = pnand %p2074_p7, %p2068_p12 }
  0x71   : > { %2078 = shalt.err (!%p2075_p10)
}
  0x72   : > { %1796 = dma.hbm_to_vmem [thread:$0]  (!%p2366_p8), %s416_s11, 1024, %s418_s18, %s2392_s16, %s2798_s29, %s2798_s29, %s2797_s28  }
  0x73   : > { %429 = sbr.rel (%p2442_p13) target bundleno = 1508 (0x5e4), region = 56 }
  0x78   : > { %2150 = dma.done.wait (%p83_p0), [#allocation3], 192  }
  0x79   : > { %2152 = vsyncadd (%p83_p0), [#allocation3], 4294967104  ;;  %s435_s26 = sand.u32 1, %s2409_s1   ;;  %s437_s14 = sand.u32 1, %s2183_s13  }
  0x7a   : > { %s1535_s17 = sshll.u32 %s437_s14, 6  ;;  %s436_s12 = scalar_lea.sflag [#allocation6], %s435_s26 }
  0x7b   : > { %s2512_s8 = scalar_lea.vmem [#allocation5], %s1535_s17 }
  0x7c   : > { %2154 = dma.done.wait (%p2420_p2), %s436_s12, 2048  }
  0x7d   : > { %2156 = vsyncadd (%p2420_p2), %s436_s12, 4294965248  ;;  %s2518_s9 = scalar_lea.vmem [#allocation7], %s1535_s17  ;;  %s454_s16 = scalar_lea.sflag [#allocation9], %s435_s26 }
  0x7e   : > { %s2520_s21 = scalar_lea.vmem [#allocation8], %s1535_s17 }
  0x7f   : > { %2158 = dma.done.wait (%p2420_p2), %s454_s16, 2048  }
  0x80   : > { %2160 = vsyncadd (%p2420_p2), %s454_s16, 4294965248  ;;  %s522_s1 = sand.u32 1, %s2171_s10   ;;  %p525_p8 = scmp.lt.s32.totalorder %s2191_s15, 1 }
  0x81   : > { %s1539_s28 = sshll.u32 %s522_s1, 3  ;;  %s2545_s14 = scalar_lea.vmem [#allocation10], %s1535_s17 }
  0x82   : > { %s2531_s29 = scalar_select %p525_p8, %s2191_s15, 1 }
  0x83   : > { %s2547_s12 = scalar_lea.vmem [#allocation11], %s1539_s28  ;;  %p1540_p9 = scmp.ne.s32.totalorder %s2191_s15, 0 }
  0x84   : > { %s527_s3 = scalar_lea.vmem %s2750_s4, %s2531_s29  ;;  %s530_s24 = scalar_lea.vmem %s2751_s5, %s2531_s29 }
  0x85   : > { %s533_s26 = scalar_lea.vmem %s2752_s6, %s2531_s29  ;;  %538 = sbr.rel (%p1540_p9) target bundleno = 147 (0x93), region = 80 }
  0x86   : > { %s2799_s18 = sld [smem:[#allocation28_spill]] (!%p1540_p9) }
  0x8a   : > { %v541_v1 = vlaneseq }
  0x8c   : > { %v539_v0 = vld [vmem:[%s2799_s18] sm:$0x1]  ;;  %v542_v3 = vshrl.u32 %v541_v1, 7 }
  0x8d   : > { %v540_v2 = vunpack.c.l.bf16 %v539_v0 }
  0x8e   : > { %v543_v4 = vsub.s32 0, %v542_v3 }
  0x90   : > { %v544_v5 = vrot.slane %v540_v2, %v543_v4 }
  0x92   : > { %545 = vst [vmem:[%s2547_s12] sm:$0xff] %v544_v5 }
  0x93 PF: > { %v1899_v6 = vld [vmem:[%s2518_s9 + $0x38] sm:$0xff]   ;;  %v1900_v7 = vld [vmem:[%s2518_s9 + $0x30] sm:$0xff]   ;;  %v2216_v8 = vmov 0.0   ;;  %vm2217_vm0 = vmmov 0   ;;  %s2800_s15 = sld [smem:[#allocation18_spill]]  ;;  %v1901_v10 = vld [vmem:[%s2518_s9 + $0x28] sm:$0xff]   ;;  %v573_v34 = vlaneseq }
  0x94   : > { %1650 = vmatprep.subr.bf16.mxu0 %v2216_v8  ;;  %1670 = vmatprep.subr.bf16.mxu1 %v1899_v6  ;;  %v1902_v9 = vld [vmem:[%s2512_s8 + $0x38] sm:$0xff]   ;;  %v1904_v11 = vld [vmem:[%s2512_s8 + $0x30] sm:$0xff]   ;;  %v1903_v12 = vld [vmem:[%s2518_s9 + $0x20] sm:$0xff]   ;;  %vm923_vm1 = vcmask 523264   ;;  %vm990_vm2 = vcmask 1043456   ;;  %vm974_vm4 = vcmask 195584  }
  0x95   : > { %1666 = vmatprep.mubr.msk.bf16.mxu0 %vm2217_vm0, %v2216_v8  ;;  %1671 = vmatpush3.bf16.msra.mxu1 %v1899_v6  ;;  %v1906_v13 = vld [vmem:[%s2512_s8 + $0x28] sm:$0xff]   ;;  %v1905_v14 = vld [vmem:[%s2518_s9 + $0x18] sm:$0xff]   ;;  %v1908_v15 = vld [vmem:[%s2512_s8 + $0x20] sm:$0xff]   ;;  %v2601_v35 = vshrl.u32 %v573_v34, 7  ;;  %s2801_s11 = sld [smem:[#allocation29_spill]]  ;;  %p2803_p2 = scmp.ne.s32.totalorder %s2792_s23, 0 }
  0x96   : > { %1672 = vmatprep.subr.bf16.mxu1 %v1900_v7  ;;  %1651 = vmatpush3.bf16.msra.mxu0 %v1902_v9  ;;  %v1913_v16 = vld [vmem:[#allocation2] sm:$0xff]   ;;  %v1909_v19 = vld [vmem:[%s2518_s9 + $0x8] sm:$0xff]   ;;  %v1911_v21 = vld [vmem:[%s2518_s9] sm:$0xff]  }
  0x97   : > { %1652 = vmatprep.subr.bf16.mxu0 %v2216_v8  ;;  %v1907_v17 = vld [vmem:[%s2518_s9 + $0x10] sm:$0xff]   ;;  %1686 = vmatprep.mubr.bf16.mxu1 %v1913_v16  ;;  %v1910_v18 = vld [vmem:[%s2512_s8 + $0x18] sm:$0xff]   ;;  %v1915_v22 = vld [vmem:[%s2512_s8 + $0x8] sm:$0xff]   ;;  %v575_v38 = vsub.s32 0, %v2601_v35 }
  0x98   : > { %v1912_v20 = vld [vmem:[%s2512_s8 + $0x10] sm:$0xff]   ;;  %v1916_v23 = vld [vmem:[%s2512_s8] sm:$0xff]   ;;  %v1914_v24 = vld [vmem:[#allocation2 + $0x8] ss:$0 sps:$4 sm:$0xff]  }
  0x99   : > { %1673 = vmatpush3.bf16.msra.mxu1 %v1900_v7  ;;  %s1541_s17 = sshll.u32 %s2800_s15, 3  ;;  %v1917_v26 = vld [vmem:[%s2520_s21 + $0x38] sm:$0xff]   ;;  %v1918_v27 = vld [vmem:[%s2520_s21 + $0x30] sm:$0xff]   ;;  %v1919_v28 = vld [vmem:[%s2520_s21 + $0x28] sm:$0xff]   ;;  %s1592_s29 = sshll.u32 %s2800_s15, 7 }
  0x9a   : > { %1674 = vmatprep.subr.bf16.mxu1 %v1901_v10  ;;  %1653 = vmatpush3.bf16.msra.mxu0 %v1904_v11  ;;  %s2572_s28 = sshra.s32 %s1541_s17, 3  ;;  %v1920_v29 = vld [vmem:[%s2520_s21 + $0x20] sm:$0xff]   ;;  %v1921_v30 = vld [vmem:[%s2520_s21 + $0x18] sm:$0xff]   ;;  %v1922_v31 = vld [vmem:[%s2520_s21 + $0x10] sm:$0xff]  }
  0x9b   : > { %1654 = vmatprep.subr.bf16.mxu0 %v2216_v8  ;;  %s1542_s27 = sshll.u32 %s2572_s28, 2  ;;  %v1923_v32 = vld [vmem:[%s2520_s21 + $0x8] sm:$0xff]   ;;  %v1924_v33 = vld [vmem:[%s2520_s21] sm:$0xff]   ;;  %v681_v36 = vld [vmem:[%s530_s24] sm:$0x1]  ;;  %s2218_s24 = smov 64  }
  0x9c   : > { %s553_s9 = scalar_lea.vmem [#allocation2], %s1542_s27  ;;  %v571_v37 = vld [vmem:[%s527_s3] sm:$0x1]  ;;  %v682_v39 = vunpack.c.l.bf16 %v681_v36  ;;  %s2802_s28 = smov %s2801_s11 }
  0x9d   : > { %1675 = vmatpush3.bf16.msra.mxu1 %v1901_v10  ;;  %v554_v25 = vld [vmem:[%s553_s9] sm:$0xf]  ;;  %v572_v40 = vunpack.c.l.bf16 %v571_v37  ;;  %s2682_s18 = scalar_lea.hbm %s2801_s11, %s1592_s29  ;;  %s2219_s27 = smov [#allocation11]  }
  0x9e   : > { %1676 = vmatprep.subr.bf16.mxu1 %v1903_v12  ;;  %1655 = vmatpush3.bf16.msra.mxu0 %v1906_v13  ;;  %v686_v41 = vrot.slane %v682_v39, %v575_v38  ;;  %v809_v60 = vld [vmem:[%s533_s26] sm:$0x1]  ;;  %s1331_s26 = sshll.u32 %s2547_s12, 4  ;;  %s2083_s9 = sshll.u32 %s2219_s27, 4  ;;  %s2684_s26 = int_to_ptr.vmem [resolvable:$true] %s1331_s26  ;;  %s2084_s9 = int_to_ptr.vmem [resolvable:$false] %s2083_s9 }
  0x9f   : > { %1656 = vmatprep.subr.bf16.mxu0 %v2216_v8  ;;  %v576_v42 = vrot.slane %v572_v40, %v575_v38  ;;  %v810_v61 = vunpack.c.l.bf16 %v809_v60  ;;  %s2079_s15 = scalar_lea.vmem %s2684_s26, 128  ;;  %s2085_s8 = scalar_lea.vmem %s2084_s9, 256 }
  0xa0   : > { %p2080_p0 = scmp.ne.s32.totalorder %s2684_s26, %s2079_s15  ;;  %p2086_p11 = scmp.lt.s32.totalorder %s2684_s26, %s2084_s9 }
  0xa1   : > { %1677 = vmatpush3.bf16.msra.mxu1 %v1903_v12  ;;  %v814_v62 = vrot.slane %v810_v61, %v575_v38  ;;  %v1930_v61 = vld [vmem:[%s2545_s14 + $0x30] sm:$0xff]   ;;  %p2087_p6 = scmp.lt.s32.totalorder %s2085_s8, %s2079_s15 }
  0xa2   : > { %1678 = vmatprep.subr.bf16.mxu1 %v1905_v14  ;;  %1657 = vmatpush3.bf16.msra.mxu0 %v1908_v15  ;;  %v918_v15 = vstv %s1541_s17  ;;  %s1318_s17 = scalar_lea.sflag [#allocation4], %s522_s1  ;;  %p2081_p13 = pnand %p2080_p0, %p2803_p2 }
  0xa3   : > { %1658 = vmatprep.subr.bf16.mxu0 %v2216_v8  ;;  %p2088_p4 = por %p2087_p6, %p2086_p11 }
  0xa4   : > { %p2082_p1 = pneg %p2081_p13 }
  0xa5   : > { %1679 = vmatpush3.bf16.msra.mxu1 %v1905_v14 }
  0xa6   : > { %1680 = vmatprep.subr.bf16.mxu1 %v1907_v17  ;;  %1659 = vmatpush3.bf16.msra.mxu0 %v1910_v18  ;;  %p2089_p12 = pnand %p2088_p4, %p2082_p1 }
  0xa7   : > { %1660 = vmatprep.subr.bf16.mxu0 %v2216_v8 }
  0xa9   : > { %1681 = vmatpush3.bf16.msra.mxu1 %v1907_v17  ;;  %v921_v17 = vand.u32 127, %v573_v34 }
  0xaa   : > { %1682 = vmatprep.subr.bf16.mxu1 %v1909_v19  ;;  %1661 = vmatpush3.bf16.msra.mxu0 %v1912_v20 }
  0xab   : > { %1662 = vmatprep.subr.bf16.mxu0 %v2216_v8 }
  0xad   : > { %1683 = vmatpush3.bf16.msra.mxu1 %v1909_v19 }
  0xae   : > { %1684 = vmatprep.subr.bf16.mxu1 %v1911_v21  ;;  %1663 = vmatpush3.bf16.msra.mxu0 %v1915_v22 }
  0xaf   : > { %1664 = vmatprep.subr.bf16.mxu0 %v2216_v8 }
  0xb1   : > { %1685 = vmatpush3.bf16.msra.mxu1 %v1911_v21 }
  0xb2   : > { %1710 = vmatprep.subr.bf16.mxu1 %v2216_v8  ;;  %1665 = vmatpush3.bf16.msra.mxu0 %v1916_v23 }
  0xb3   : > { %1690 = vmatprep.subr.bf16.mxu0 %v1917_v26 }
  0xb4   : > { %1687 = vmatmul.mubr.bf16.vlgmr.msra.gmra.mxu1 %v1914_v24 }
  0xb5   : > { %1714 = vmatprep.mubr.msk.bf16.mxu1 %vm2217_vm0, %v2216_v8  ;;  %1667 = vmatmul.mubr.bf16.vlgmr.msra.gmra.mxu0 %v554_v25 }
  0xb6   : > { %1706 = vmatprep.mubr.bf16.mxu0 %v1913_v16  ;;  %1691 = vmatpush3.bf16.msra.mxu0 %v1917_v26  ;;  %v919_v16 = vadd.s32 %v918_v15, %v2601_v35 }
  0xb7   : > { %1692 = vmatprep.subr.bf16.mxu0 %v1918_v27 }
  0xb8   : > { %vm922_vm3 = vcmp.le.s32.totalorder %v921_v17, %v919_v16 }
  0xba   : > { %1693 = vmatpush3.bf16.msra.mxu0 %v1918_v27 }
  0xbb   : > { %1694 = vmatprep.subr.bf16.mxu0 %v1919_v28 }
  0xbe   : > { %1695 = vmatpush3.bf16.msra.mxu0 %v1919_v28 }
  0xbf   : > { %1696 = vmatprep.subr.bf16.mxu0 %v1920_v29 }
  0xc2   : > { %1697 = vmatpush3.bf16.msra.mxu0 %v1920_v29 }
  0xc3   : > { %1698 = vmatprep.subr.bf16.mxu0 %v1921_v30 }
  0xc6   : > { %1699 = vmatpush3.bf16.msra.mxu0 %v1921_v30 }
  0xc7   : > { %1700 = vmatprep.subr.bf16.mxu0 %v1922_v31 }
  0xca   : > { %1701 = vmatpush3.bf16.msra.mxu0 %v1922_v31 }
  0xcb   : > { %1702 = vmatprep.subr.bf16.mxu0 %v1923_v32 }
  0xce   : > { %1703 = vmatpush3.bf16.msra.mxu0 %v1923_v32 }
  0xcf   : > { %1704 = vmatprep.subr.bf16.mxu0 %v1924_v33 }
  0xd2   : > { %1705 = vmatpush3.bf16.msra.mxu0 %v1924_v33 }
  0xd3   : > { %1738 = vmatprep.subr.bf16.mxu0 %v2216_v8 }
  0xd5   : > { %1707 = vmatmul.mubr.bf16.vlgmr.msra.gmra.mxu0 %v1914_v24 }
  0xd6   : > { %1742 = vmatprep.mubr.msk.bf16.mxu0 %vm2217_vm0, %v2216_v8 }
 0x174   : > { %v1688_v43 = vpop.f32.mrf.mxu1 }
 0x175   : > { %v788_v44 = vadd.f32 %v1688_v43, %v686_v41  ;;  %v659_v46 = vpop.f32.mrf.mxu0 }
 0x176   : > { %v779_v45 = vpop.f32.mrf.mxu1  ;;  %v660_v48 = vadd.f32 %v659_v46, %v576_v42  ;;  %v1927_v46 = vld [vmem:[%s2545_s14 + $0x8] sm:$0xff]  }
 0x177   : > { %v913_v47 = vpack.c.bf16 %v788_v44, %v788_v44  ;;  %v1668_v50 = vpop.f32.mrf.mxu0  ;;  %v780_v55 = vadd.f32 %v779_v45, %v686_v41  ;;  %v1925_v44 = vld [vmem:[%s2545_s14 + $0x18] sm:$0xff]   ;;  %v1926_v45 = vld [vmem:[%s2545_s14 + $0x10] sm:$0xff]  }
 0x178   : > { %v1689_v49 = vpop.f32.mrf.mxu1  ;;  %v911_v52 = vpack.c.bf16 %v660_v48, %v660_v48  ;;  %v1929_v48 = vld [vmem:[%s2545_s14 + $0x38] sm:$0xff]  }
 0x179   : > { %v931_v51 = vsel %vm923_vm1, %v913_v47, 0  ;;  %1120 = vrot.lane.b32.xlu0 %v913_v47, %s2218_s24  ;;  %v662_v54 = vpop.f32.mrf.mxu0  ;;  %v1928_v47 = vld [vmem:[%s2545_s14] sm:$0xff]  }
 0x17a   : > { %v782_v53 = vpop.f32.mrf.mxu1  ;;  %1711 = vmatpush3.bf16.xpose.msra.mxu1 %v931_v51  ;;  %1114 = vrot.lane.b32.xlu1 %v911_v52, %s2218_s24 }
 0x17b   : > { %v783_v56 = vadd.f32 %v782_v53, %v686_v41  ;;  %1712 = vmatprep.subr.bf16.mxu1 %v2216_v8  ;;  %v1669_v57 = vpop.f32.mrf.mxu0 }
 0x17d   : > { %v912_v58 = vpack.c.bf16 %v783_v56, %v780_v55 }
 0x17f   : > { %1118 = vrot.lane.b32.xlu0 %v912_v58, %s2218_s24  ;;  %v928_v59 = vsel %vm923_vm1, %v912_v58, 0 }
 0x182   : > { %1713 = vmatpush3.bf16.xpose.msra.mxu1 %v928_v59 }
 0x183   : > { %1718 = vmatprep.subr.bf16.mxu1 %v2216_v8 }
 0x189   : > { %1715 = vmatmul.mubr.msk.bf16.vlgmr.msra.gmra.mxu1 %vm923_vm1, %v911_v52 }
 0x18a   : > { %1722 = vmatprep.mubr.msk.bf16.mxu1 %vm2217_vm0, %v2216_v8 }
 0x195   : > { %v1708_v0 = vpop.f32.mrf.mxu0 }
 0x196   : > { %v906_v2 = vadd.f32 %v1708_v0, %v814_v62 }
 0x197   : > { %v897_v3 = vpop.f32.mrf.mxu0 }
 0x198   : > { %v915_v4 = vpack.c.bf16 %v906_v2, %v906_v2  ;;  %v898_v7 = vadd.f32 %v897_v3, %v814_v62 }
 0x199   : > { %v1709_v5 = vpop.f32.mrf.mxu0 }
 0x19a   : > { %v992_v6 = vsel %vm990_vm2, %v915_v4, 0 }
 0x19b   : > { %v900_v10 = vpop.f32.mrf.mxu0  ;;  %1719 = vmatpush3.bf16.msra.mxu1 %v992_v6 }
 0x19c   : > { %v901_v11 = vadd.f32 %v900_v10, %v814_v62  ;;  %1720 = vmatprep.subr.bf16.mxu1 %v2216_v8  ;;  %v1931_v62 = vld [vmem:[%s2545_s14 + $0x28] sm:$0xff]  }
 0x19d   : > { %v1034_v10 = vld [vmem:[%s2547_s12] sm:$0xff] }
 0x19e   : > { %v914_v13 = vpack.c.bf16 %v901_v11, %v898_v7 }
 0x1a0   : > { %1721 = vmatpush3.bf16.msra.mxu1 %v914_v13 }
 0x1a1   : > { %1726 = vmatprep.subr.bf16.mxu1 %v2216_v8 }
 0x1eb   : > { %v1121_v63 = vpop.permute.xlu0 %1120 }
 0x1ec   : > { %v1129_v1 = vsel %vm923_vm1, %v1121_v63, 0  ;;  %v1115_v14 = vpop.permute.xlu1 %1114  ;;  %v1932_v63 = vld [vmem:[%s2545_s14 + $0x20] sm:$0xff]  }
 0x1ed   : > { %1739 = vmatpush3.bf16.xpose.msra.mxu0 %v1129_v1 }
 0x1ee   : > { %1740 = vmatprep.subr.bf16.mxu0 %v2216_v8 }
 0x1f1   : > { %v1119_v9 = vpop.permute.xlu0 %1118 }
 0x1f2   : > { %v1126_v12 = vsel %vm923_vm1, %v1119_v9, 0 }
 0x1f5   : > { %1741 = vmatpush3.bf16.xpose.msra.mxu0 %v1126_v12 }
 0x1f6   : > { %1754 = vmatprep.subr.bf16.mxu0 %v2216_v8 }
 0x1fc   : > { %1743 = vmatmul.mubr.msk.bf16.vlgmr.msra.gmra.mxu0 %vm923_vm1, %v1115_v14 }
 0x1fd   : > { %1762 = vmatprep.mubr.msk.bf16.mxu0 %vm2217_vm0, %v2216_v8  ;;  %1755 = vmatpush3.bf16.msra.mxu0 %v1929_v48 }
 0x1fe   : > { %1756 = vmatprep.subr.bf16.mxu0 %v2216_v8 }
 0x201   : > { %1757 = vmatpush3.bf16.msra.mxu0 %v1930_v61 }
 0x202   : > { %1758 = vmatprep.subr.bf16.mxu0 %v2216_v8 }
 0x205   : > { %1759 = vmatpush3.bf16.msra.mxu0 %v1931_v62 }
 0x206   : > { %1760 = vmatprep.subr.bf16.mxu0 %v2216_v8 }
 0x209   : > { %1761 = vmatpush3.bf16.msra.mxu0 %v1932_v63 }
 0x249   : > { %v967_v18 = vpop.f32.mrf.mxu1 }
 0x24a   : > { %v973_v19 = vsel %vm922_vm3, %v967_v18, -1e+30 }
 0x24b   : > { %v1716_v20 = vpop.f32.mrf.mxu1  ;;  %v975_v21 = vsel %vm974_vm4, %v973_v19, -inf }
 0x24c   : > { %976 = vmax.xlane.f32.xlu1 %v975_v21 }
 0x24d   : > { %v970_v22 = vpop.f32.mrf.mxu1 }
 0x24f   : > { %v1717_v23 = vpop.f32.mrf.mxu1 }
 0x2bc   : > { %v1165_v24 = vpop.f32.mrf.mxu0 }
 0x2bd   : > { %v1171_v33 = vsel %vm922_vm3, %v1165_v24, -1e+30 }
 0x2be   : > { %v1744_v25 = vpop.f32.mrf.mxu0  ;;  %v1172_v34 = vsel %vm974_vm4, %v1171_v33, -inf }
 0x2c0   : > { %v1168_v26 = vpop.f32.mrf.mxu0 }
 0x2c2   : > { %v1745_v27 = vpop.f32.mrf.mxu0 }
 0x2d5   : > { %v977_v28 = vpop.xlane.xlu1 %976 }
 0x2d6   : > { %v978_v29 = vsub.f32 %v973_v19, %v977_v28 }
 0x2d8   : > { %v979_v30 = vmul.f32 1.442695, %v978_v29 }
 0x2da   : > { %1933 = vpow2.f32 %v979_v30 }
 0x2e7   : > { %v1934_v31 = vpop.eup %1933 }
 0x2e8   : > { %v981_v32 = vsel %vm974_vm4, %v1934_v31, 0.0 }
 0x2e9   : > { %982 = vadd.xlane.f32.xlu0 %v981_v32 }
 0x2ed   : > { %1173 = vmax.xlane.f32.xlu0 %v1172_v34 }
 0x303   : > { %1188 = vrot.lane.b32.xlu0 %v915_v4, %s2218_s24 }
 0x372   : > { %v983_v35 = vpop.xlane.xlu0 %982 }
 0x373   : > { %1935 = vrcp.f32 %v983_v35 }
 0x376   : > { %v1174_v36 = vpop.xlane.xlu0 %1173 }
 0x377   : > { %v1175_v37 = vsub.f32 %v1171_v33, %v1174_v36 }
 0x379   : > { %v1176_v38 = vmul.f32 1.442695, %v1175_v37 }
 0x37a   : > { %v1189_v50 = vpop.permute.xlu0 %1188 }
 0x37b   : > { %1937 = vpow2.f32 %v1176_v38  ;;  %v1195_v55 = vsel %vm990_vm2, %v1189_v50, 0 }
 0x380   : > { %v1936_v39 = vpop.eup %1935 }
 0x381   : > { %v985_v40 = vmul.f32 %v1936_v39, %v1934_v31 }
 0x383   : > { %v986_v41 = vpack.c.bf16 %v985_v40, %v985_v40 }
 0x385   : > { %1723 = vmatmul.mubr.msk.bf16.vlgmr.msra.gmra.mxu1 %vm974_vm4, %v986_v41 }
 0x386   : > { %1734 = vmatprep.mubr.msk.bf16.mxu1 %vm2217_vm0, %v2216_v8  ;;  %1727 = vmatpush3.bf16.msra.mxu1 %v1925_v44 }
 0x387   : > { %1728 = vmatprep.subr.bf16.mxu1 %v2216_v8 }
 0x388   : > { %v1938_v42 = vpop.eup %1937 }
 0x389   : > { %v1178_v43 = vsel %vm974_vm4, %v1938_v42, 0.0 }
 0x38a   : > { %1179 = vadd.xlane.f32.xlu1 %v1178_v43  ;;  %1729 = vmatpush3.bf16.msra.mxu1 %v1926_v45 }
 0x38b   : > { %1730 = vmatprep.subr.bf16.mxu1 %v2216_v8 }
 0x38e   : > { %1731 = vmatpush3.bf16.msra.mxu1 %v1927_v46 }
 0x38f   : > { %1732 = vmatprep.subr.bf16.mxu1 %v2216_v8 }
 0x392   : > { %1733 = vmatpush3.bf16.msra.mxu1 %v1928_v47 }
 0x393   : > { %1746 = vmatprep.subr.bf16.mxu1 %v2216_v8 }
 0x39b   : > { %1186 = vrot.lane.b32.xlu1 %v914_v13, %s2218_s24 }
 0x413   : > { %v1180_v49 = vpop.xlane.xlu1 %1179 }
 0x414   : > { %1939 = vrcp.f32 %v1180_v49 }
 0x417   : > { %v1187_v59 = vpop.permute.xlu1 %1186 }
 0x421   : > { %v1940_v53 = vpop.eup %1939 }
 0x422   : > { %v1182_v57 = vmul.f32 %v1940_v53, %v1938_v42 }
 0x424   : > { %v1183_v60 = vpack.c.bf16 %v1182_v57, %v1182_v57 }
 0x445   : > { %v1028_v51 = vpop.f32.mrf.mxu1 }
 0x446   : > { %v1035_v52 = vpack.c.bf16 %v1028_v51, %v1028_v51 }
 0x447   : > { %v1724_v54 = vpop.f32.mrf.mxu1 }
 0x448   : > { %1735 = vmatmul.mubr.msk.bf16.vlgmr.msra.gmra.mxu1 %vm923_vm1, %v1035_v52 }
 0x449   : > { %1747 = vmatpush3.bf16.msra.mxu1 %v1195_v55  ;;  %v1031_v56 = vpop.f32.mrf.mxu1  ;;  %1750 = vmatprep.mubr.msk.bf16.mxu1 %vm2217_vm0, %v2216_v8 }
 0x44a   : > { %1748 = vmatprep.subr.bf16.mxu1 %v2216_v8 }
 0x44b   : > { %v1725_v58 = vpop.f32.mrf.mxu1 }
 0x44d   : > { %1749 = vmatpush3.bf16.msra.mxu1 %v1187_v59 }
 0x450   : > { %1751 = vmatmul.mubr.msk.bf16.vlgmr.msra.gmra.mxu1 %vm974_vm4, %v1183_v60 }
 0x508   : > { %v1105_v0 = vpop.f32.mrf.mxu1 }
 0x509   : > { %v1111_v8 = vadd.f32 %v1105_v0, %v1034_v10 }
 0x50a   : > { %v1736_v1 = vpop.f32.mrf.mxu1 }
 0x50c   : > { %v1108_v2 = vpop.f32.mrf.mxu1 }
 0x50e   : > { %v1737_v3 = vpop.f32.mrf.mxu1 }
 0x510   : > { %v1231_v4 = vpop.f32.mrf.mxu1 }
 0x511   : > { %v1238_v5 = vpack.c.bf16 %v1231_v4, %v1231_v4 }
 0x512   : > { %v1752_v6 = vpop.f32.mrf.mxu1 }
 0x513   : > { %1763 = vmatmul.mubr.msk.bf16.vlgmr.msra.gmra.mxu0 %vm923_vm1, %v1238_v5 }
 0x514   : > { %v1234_v7 = vpop.f32.mrf.mxu1 }
 0x516   : > { %v1753_v9 = vpop.f32.mrf.mxu1 }
 0x5d3   : > { %v1309_v11 = vpop.f32.mrf.mxu0 }
 0x5d4   : > { %v1315_v12 = vadd.f32 %v1309_v11, %v1111_v8 }
 0x5d5   : > { %v1764_v13 = vpop.f32.mrf.mxu0 }
 0x5d6   : > { %1316 = vst [vmem:[%s2547_s12] sm:$0xff] %v1315_v12 }
 0x5d7   : > { %v1312_v14 = vpop.f32.mrf.mxu0 }
 0x5d8   : > { %2092 = shalt.err (!%p2089_p12)
}
 0x5d9   : > { %s2093_s12 = scalar_lea.hbm %s2682_s18, 128  ;;  %s2097_s20 = scalar_lea.hbm %s2802_s28, 384 }
 0x5da   : > { %p2094_p3 = scmp.ne.s32.totalorder %s2682_s18, %s2093_s12  ;;  %p2098_p10 = scmp.lt.s32.totalorder %s2682_s18, %s2802_s28 }
 0x5db   : > { %p2099_p8 = scmp.lt.s32.totalorder %s2097_s20, %s2093_s12 }
 0x5dc   : > { %p2095_p5 = pnand %p2094_p3, %p2803_p2 }
 0x5dd   : > { %p2100_p9 = por %p2099_p8, %p2098_p10 }
 0x5de   : > { %p2096_p7 = pneg %p2095_p5 }
 0x5e0   : > { %p2101_p0 = pnand %p2100_p9, %p2096_p7 }
 0x5e2   : > { %2104 = shalt.err (!%p2101_p0)
}
 0x5e3   : > { %1778 = dma.vmem_to_hbm [thread:$0]  (%p2803_p2), %s2684_s26, 128, %s2682_s18, %s1318_s17   ;;  %v1765_v15 = vpop.f32.mrf.mxu0 }
 0x5e4 PF: > { %s2804_s3 = sld [smem:[#allocation25_spill]]  ;;  %p1804_p13 = scmp.ge.s32.totalorder %s2207_s19, 2 }
 0x5e5   : > { %s1343_s22 = sand.u32 1, %s2167_s30  }
 0x5e6   : > { %s1344_s29 = scalar_lea.sflag [#allocation4], %s1343_s22 }
 0x5ea   : > { %p2805_p1 = scmp.ne.s32.totalorder %s2804_s3, 0 }
 0x5ec   : > { %p1798_p11 = pnand %p1804_p13, %p2805_p1 }
 0x5ee   : > { %p1799_p6 = pneg %p1798_p11 }
 0x5f0   : > { %2162 = dma.done.wait (%p1799_p6), %s1344_s29, 128  }
 0x5f1   : > { %2164 = vsyncadd (%p1799_p6), %s1344_s29, 4294967168  ;;  %s29_s19 = sadd.s32 1, %s2207_s19   ;;  %s2806_s23 = sld [smem:[#allocation16_spill]] }
 0x5f2   : > { %p26_p4 = scmp.ge.s32.totalorder %s29_s19, 8   ;;  %s2807_s11 = sld [smem:[#allocation24_spill]] }
 0x5f3   : > { %s2808_s26 = sld [smem:[#allocation17_spill]]  ;;  %s2814_s30 = smov %s2171_s10 }
 0x5f4   : > { %s2809_s14 = sld [smem:[#allocation23_spill]]  ;;  %s2816_s12 = smov %s2183_s13 }
 0x5f5   : > { %s2810_s15 = sld [smem:[#allocation19_spill]]  ;;  %28 = sbr.rel (!%p26_p4) target bundleno = 17 (0x11), region = 156 }
 0x5f6   : > { %s2811_s16 = sld [smem:[#allocation20_spill]] }
 0x5f7   : > { %s2812_s17 = sld [smem:[#allocation21_spill]]  ;;  %s2815_s10 = smov %s2806_s23 }
 0x5f8   : > { %s2813_s18 = sld [smem:[#allocation22_spill]] }
 0x5f9   : > { %s2817_s13 = smov %s2808_s26 }
 0x5fa   :  { %1349 = vsyncpa [#allocation3], 1 }
 0x5fb   :  { %1351 = vsyncpa [#allocation3 + $0x1], 1 }
 0x5fc   :  { %1352 = vsyncpa [#allocation6], 1 }
 0x5fd   :  { %1354 = vsyncpa [#allocation6 + $0x1], 1 }
 0x5fe   :  { %1355 = vsyncpa [#allocation9], 1 }
 0x5ff   :  { %1357 = vsyncpa [#allocation9 + $0x1], 1 }
 0x600   :  { %1358 = vsyncpa [#allocation4], 1 }
 0x601   :  { %1360 = vsyncpa [#allocation4 + $0x1], 1 }

</bundles_post_ra>
